<compile_context>
chip_gen: v7x
topology: tpu7x:2x2x1
jax: 0.10.0
libtpu: 0.0.40
codegen_flags: <defaults>
</compile_context>

<pallas_src>
import functools

import jax
import jax.numpy as jnp
from jax.experimental import pallas as pl
from jax.experimental.pallas import tpu as pltpu

HIDDEN = 128
LANE = 128
SUBLANE = 8
TM_MAX = 1024  # batch tile cap; per-step VMEM stays ~2-3 MB even at 1024


def _round_up(x, m):
    return (x + m - 1) // m * m


# ----------------------------------------------------------------------------
# Kernel: one fused MLP step on a (TM, K) batch tile.
#   x_ref : (TM, K)            input tile (any float dtype; cast in-kernel)
#   w_ref : (K8 + 256, Np)     packed [w1 | w2 | w3] in compute dtype
#   b_ref : (3, Np)            packed [b1 ; b2 ; b3] in f32
#   o_ref : (TM, Np)           lane-dense Q-value tile
# ----------------------------------------------------------------------------
def dqn_kernel(x_ref, w_ref, b_ref, o_ref, *, K, K8, H):
    cdt = w_ref.dtype
    x = x_ref[...].astype(cdt)

    # fc1 + ReLU (MXU matmul, f32 accumulation; bias/ReLU in f32)
    h1 = jnp.dot(x, w_ref[:K, :H], preferred_element_type=jnp.float32)
    h1 = jnp.maximum(h1 + b_ref[0:1, :H], 0.0)

    # fc2 + ReLU
    h2 = jnp.dot(h1.astype(cdt), w_ref[K8:K8 + H, :H],
                 preferred_element_type=jnp.float32)
    h2 = jnp.maximum(h2 + b_ref[1:2, :H], 0.0)

    # fc3 (no activation -> Q-values), lane-dense Np-wide output
    q = jnp.dot(h2.astype(cdt), w_ref[K8 + H:K8 + 2 * H, :],
                preferred_element_type=jnp.float32)
    o_ref[...] = (q + b_ref[2:3, :]).astype(o_ref.dtype)


# ----------------------------------------------------------------------------
# One-time parameter preparation: pack + pad + cast (runs once, not per call).
# Weights are stored [in_features, out_features] so the kernel computes
# x @ W + b, equivalent to PyTorch's x @ W_pt.T + b.
# ----------------------------------------------------------------------------
def prepare_params(params, *, compute_dtype=jnp.bfloat16):
    w1 = jnp.asarray(params["w1"], jnp.float32)
    w2 = jnp.asarray(params["w2"], jnp.float32)
    w3 = jnp.asarray(params["w3"], jnp.float32)
    b1 = jnp.asarray(params["b1"], jnp.float32).reshape(1, -1)
    b2 = jnp.asarray(params["b2"], jnp.float32).reshape(1, -1)
    b3 = jnp.asarray(params["b3"], jnp.float32).reshape(1, -1)

    K, H = w1.shape
    N = w3.shape[1]
    assert H == HIDDEN and w2.shape == (H, H) and w3.shape[0] == H

    K8 = _round_up(K, SUBLANE)                 # sublane-align w1's rows
    Np = _round_up(max(N, LANE), LANE)         # lane-dense output width

    w_packed = jnp.zeros((K8 + 2 * H, Np), jnp.float32)
    w_packed = w_packed.at[:K, :H].set(w1)
    w_packed = w_packed.at[K8:K8 + H, :H].set(w2)
    w_packed = w_packed.at[K8 + H:K8 + 2 * H, :N].set(w3)
    w_packed = w_packed.astype(compute_dtype)

    b_packed = jnp.zeros((3, Np), jnp.float32)
    b_packed = b_packed.at[0, :H].set(b1[0])
    b_packed = b_packed.at[1, :H].set(b2[0])
    b_packed = b_packed.at[2, :N].set(b3[0])

    return {"W": w_packed, "b": b_packed, "K": K, "K8": K8, "N": N, "Np": Np}


# ----------------------------------------------------------------------------
# Forward pass.
# ----------------------------------------------------------------------------
def dqn_forward(x, prepared, *, tm_max=TM_MAX, out_dtype=jnp.float32):
    B, K = x.shape
    assert K == prepared["K"], "feature dim mismatch with prepared params"
    W, Bias = prepared["W"], prepared["b"]
    K8, N, Np, H = prepared["K8"], prepared["N"], prepared["Np"], HIDDEN

    # Batch tile: no batch padding, no batch copy. Ragged last block is fine
    # (no cross-row reduction in the kernel; OOB output rows are discarded).
    # NOTE: any future in-kernel batch reduction would need explicit masking.
    if B <= SUBLANE:
        TM = B  # block == full extent (legal for any B)
    else:
        # >= 2 grid steps for larger batches so the "parallel" batch axis
        # feeds both TensorCores on v7x; sublane-aligned; capped at TM_MAX.
        TM = min(tm_max, _round_up(pl.cdiv(B, 2), SUBLANE))
    grid = (pl.cdiv(B, TM),)

    kernel = functools.partial(dqn_kernel, K=K, K8=K8, H=H)

    # Weights/biases stay resident in VMEM across all grid steps.
    def resident(a):
        return pl.BlockSpec(a.shape, lambda i: (0,) * a.ndim)

    flops = 2 * B * (K * H + H * H + H * Np)
    bytes_accessed = (
        x.size * x.dtype.itemsize
        + W.size * W.dtype.itemsize
        + Bias.size * 4
        + B * Np * jnp.dtype(out_dtype).itemsize
    )

    out = pl.pallas_call(
        kernel,
        out_shape=jax.ShapeDtypeStruct((B, Np), out_dtype),
        grid=grid,
        in_specs=[
            pl.BlockSpec((TM, K), lambda i: (i, 0)),  # x: batch-tiled, K unpadded
            resident(W),
            resident(Bias),
        ],
        out_specs=pl.BlockSpec((TM, Np), lambda i: (i, 0)),
        compiler_params=pltpu.CompilerParams(
            dimension_semantics=("parallel",)),
        cost_estimate=pl.CostEstimate(
            flops=flops, transcendentals=0, bytes_accessed=bytes_accessed),
    )(x, W, Bias)

    return out[:, :N]


# ----------------------------------------------------------------------------
# Deterministic init mimicking PyTorch nn.Linear default (U(+/- 1/sqrt(fan_in))).
# ----------------------------------------------------------------------------
def init_params(key, num_inputs, num_actions, hidden=HIDDEN):
    keys = jax.random.split(key, 6)

    def linear(kw, kb, fan_in, fan_out):
        bound = 1.0 / jnp.sqrt(fan_in)
        w = jax.random.uniform(kw, (fan_in, fan_out), jnp.float32, -bound, bound)
        b = jax.random.uniform(kb, (1, fan_out), jnp.float32, -bound, bound)
        return w, b

    w1, b1 = linear(keys[0], keys[1], num_inputs, hidden)
    w2, b2 = linear(keys[2], keys[3], hidden, hidden)
    w3, b3 = linear(keys[4], keys[5], hidden, num_actions)
    return {"w1": w1, "b1": b1, "w2": w2, "b2": b2, "w3": w3, "b3": b3}


def reference_forward(x, p):
    hp = jax.lax.Precision.HIGHEST
    h1 = jnp.maximum(jnp.dot(x, p["w1"], precision=hp) + p["b1"], 0.0)
    h2 = jnp.maximum(jnp.dot(h1, p["w2"], precision=hp) + p["b2"], 0.0)
    return jnp.dot(h2, p["w3"], precision=hp) + p["b3"]


if __name__ == "__main__":
    key = jax.random.PRNGKey(0)
    k_x, k_p, k_xl = jax.random.split(key, 3)

    batch = 4
    num_inputs = 8     # e.g. state-vector dimension
    num_actions = 4    # e.g. discrete action count

    x = jax.random.normal(k_x, (batch, num_inputs), jnp.float32)
    params = init_params(k_p, num_inputs, num_actions)
    q_ref = reference_forward(x, params)

    # f32 compute path — tight match vs reference.
    prep_f32 = prepare_params(params, compute_dtype=jnp.float32)
    q = jax.block_until_ready(dqn_forward(x, prep_f32))
    assert q.shape == (batch, num_actions)
    assert jnp.allclose(q, q_ref, atol=1e-3, rtol=1e-3), "f32 mismatch vs reference"

    # bf16 default compute (v6e/v7x MXU fast path), f32 accumulation.
    prep_bf16 = prepare_params(params)  # compute_dtype defaults to bf16
    q_bf = jax.block_until_ready(dqn_forward(x, prep_bf16))
    assert q_bf.shape == (batch, num_actions)
    assert jnp.allclose(q_bf, q_ref, atol=1e-1, rtol=1e-1), "bf16 mismatch vs reference"

    # Larger, non-divisible batch -> >= 2 grid steps with a ragged last block.
    x_large = jax.random.normal(k_xl, (300, num_inputs), jnp.float32)
    q_large = jax.block_until_ready(dqn_forward(x_large, prep_f32))
    q_large_ref = reference_forward(x_large, params)
    assert q_large.shape == (300, num_actions)
    assert jnp.allclose(q_large, q_large_ref, atol=1e-3, rtol=1e-3), "tiled mismatch"

    print("KERNEL_OK")
</pallas_src>

<mosaic_0001>
module attributes {stable_mosaic.version = 11 : i64} {
  func.func @dqn_kernel(%arg0: i32, %arg1: memref<4x8xf32, #tpu.memory_space<vmem>>, %arg2: memref<264x128xf32, #tpu.memory_space<vmem>>, %arg3: memref<3x128xf32, #tpu.memory_space<vmem>>, %arg4: memref<4x128xf32, #tpu.memory_space<vmem>>) attributes {dimension_semantics = [#tpu.dimension_semantics<parallel>], iteration_bounds = array<i64: 1>, scalar_prefetch = 0 : i64, scratch_operands = 0 : i64, tpu.core_type = #tpu.core_type<tc>, window_params = [{transform_indices = @transform_0, window_bounds = array<i64: 4, 8>}, {pipeline_mode = #tpu.pipeline_mode<synchronous>, transform_indices = @transform_1, window_bounds = array<i64: 264, 128>}, {pipeline_mode = #tpu.pipeline_mode<synchronous>, transform_indices = @transform_2, window_bounds = array<i64: 3, 128>}, {transform_indices = @transform_3, window_bounds = array<i64: 4, 128>}]} {
    %c0 = arith.constant 0 : index
    %c0_0 = arith.constant 0 : index
    %0 = vector.load %arg1[%c0, %c0_0] : memref<4x8xf32, #tpu.memory_space<vmem>>, vector<4x8xf32>
    %c0_1 = arith.constant 0 : index
    %c0_2 = arith.constant 0 : index
    %1 = vector.load %arg2[%c0_1, %c0_2] : memref<264x128xf32, #tpu.memory_space<vmem>>, vector<8x128xf32>
    %cst = arith.constant dense<0.000000e+00> : vector<4x128xf32>
    %2 = tpu.matmul %0, %1, %cst {dimension_numbers = #tpu.dot_dimension_numbers<[1], [0], [0], [1], [0, 0, 1, 1], [], []>} : vector<4x8xf32>, vector<8x128xf32>, vector<4x128xf32> -> vector<4x128xf32>
    %c0_3 = arith.constant 0 : index
    %c0_4 = arith.constant 0 : index
    %3 = vector.load %arg3[%c0_3, %c0_4] : memref<3x128xf32, #tpu.memory_space<vmem>>, vector<1x128xf32>
    %4 = vector.broadcast %3 : vector<1x128xf32> to vector<4x128xf32>
    %5 = arith.addf %2, %4 : vector<4x128xf32>
    %cst_5 = arith.constant 0.000000e+00 : f32
    %6 = vector.broadcast %cst_5 : f32 to vector<4x128xf32>
    %7 = arith.maximumf %5, %6 : vector<4x128xf32>
    %c8 = arith.constant 8 : index
    %c0_6 = arith.constant 0 : index
    %8 = vector.load %arg2[%c8, %c0_6] : memref<264x128xf32, #tpu.memory_space<vmem>>, vector<128x128xf32>
    %cst_7 = arith.constant dense<0.000000e+00> : vector<4x128xf32>
    %9 = tpu.matmul %7, %8, %cst_7 {dimension_numbers = #tpu.dot_dimension_numbers<[1], [0], [0], [1], [0, 0, 1, 1], [], []>} : vector<4x128xf32>, vector<128x128xf32>, vector<4x128xf32> -> vector<4x128xf32>
    %c1 = arith.constant 1 : index
    %c0_8 = arith.constant 0 : index
    %10 = vector.load %arg3[%c1, %c0_8] : memref<3x128xf32, #tpu.memory_space<vmem>>, vector<1x128xf32>
    %11 = vector.broadcast %10 : vector<1x128xf32> to vector<4x128xf32>
    %12 = arith.addf %9, %11 : vector<4x128xf32>
    %cst_9 = arith.constant 0.000000e+00 : f32
    %13 = vector.broadcast %cst_9 : f32 to vector<4x128xf32>
    %14 = arith.maximumf %12, %13 : vector<4x128xf32>
    %c136 = arith.constant 136 : index
    %c0_10 = arith.constant 0 : index
    %15 = vector.load %arg2[%c136, %c0_10] : memref<264x128xf32, #tpu.memory_space<vmem>>, vector<128x128xf32>
    %cst_11 = arith.constant dense<0.000000e+00> : vector<4x128xf32>
    %16 = tpu.matmul %14, %15, %cst_11 {dimension_numbers = #tpu.dot_dimension_numbers<[1], [0], [0], [1], [0, 0, 1, 1], [], []>} : vector<4x128xf32>, vector<128x128xf32>, vector<4x128xf32> -> vector<4x128xf32>
    %c2 = arith.constant 2 : index
    %c0_12 = arith.constant 0 : index
    %17 = vector.load %arg3[%c2, %c0_12] : memref<3x128xf32, #tpu.memory_space<vmem>>, vector<1x128xf32>
    %18 = vector.broadcast %17 : vector<1x128xf32> to vector<4x128xf32>
    %19 = arith.addf %16, %18 : vector<4x128xf32>
    %c0_13 = arith.constant 0 : index
    %c0_14 = arith.constant 0 : index
    %20 = vector.load %arg4[%c0_13, %c0_14] : memref<4x128xf32, #tpu.memory_space<vmem>>, vector<4x128xf32>
    tpu.vector_store %arg4[%c0_13, %c0_14], %19 {strides = array<i32>} : memref<4x128xf32, #tpu.memory_space<vmem>>, vector<4x128xf32>,
    return
  }
  func.func @transform_0(%arg0: i32) -> (i32, i32) {
    %c0_i32 = arith.constant 0 : i32
    %c0_i32_0 = arith.constant 0 : i32
    return %arg0, %c0_i32 : i32, i32
  }
  func.func @transform_1(%arg0: i32) -> (i32, i32) {
    %c0_i32 = arith.constant 0 : i32
    %c0_i32_0 = arith.constant 0 : i32
    %c0_i32_1 = arith.constant 0 : i32
    return %c0_i32, %c0_i32_0 : i32, i32
  }
  func.func @transform_2(%arg0: i32) -> (i32, i32) {
    %c0_i32 = arith.constant 0 : i32
    %c0_i32_0 = arith.constant 0 : i32
    %c0_i32_1 = arith.constant 0 : i32
    return %c0_i32, %c0_i32_0 : i32, i32
  }
  func.func @transform_3(%arg0: i32) -> (i32, i32) {
    %c0_i32 = arith.constant 0 : i32
    %c0_i32_0 = arith.constant 0 : i32
    return %arg0, %c0_i32 : i32, i32
  }
}

</mosaic_0001>

<bundles_post_ra>
// kernel: tpu_custom_call.1
= control target key start
LH: loop header
LB: loop body
LE: loop exit
PB: predicated region body
PF: predicated region fallthrough
CT: control target
= control target key end

     0   :  { %8 = vsyncpa [#allocation3], 0  ;;  %s665_s0 = inlined_call_operand.hbm [shape: f32[4,8], index: 0, kind: input, shape index: {}]   ;;  %s666_s1 = inlined_call_operand.hbm [shape: f32[264,128], index: 1, kind: input, shape index: {}]   ;;  %s667_s2 = inlined_call_operand.vmem [shape: f32[3,128], index: 2, kind: input, shape index: {}]   ;;  %s668_s3 = inlined_call_operand.hbm [shape: f32[4,128], index: 3, kind: output, shape index: {}]  }
   0x1   :  { %9 = vsyncpa [#allocation6], 0 }
   0x2   :  { %10 = vsyncpa [#allocation4], 0  ;;  %s566_s12 = smov [#allocation2]   ;;  %s567_s14 = smov [#allocation5]  }
   0x3   :  { %s17_s13 = sshll.u32 %s566_s12, 4  ;;  %s26_s15 = sshll.u32 %s567_s14, 4  ;;  %s18_s13 = int_to_ptr.vmem [resolvable:$true] %s17_s13  ;;  %s594_s15 = int_to_ptr.vmem [resolvable:$true] %s26_s15 }
   0x4   :  { %s494_s18 = scalar_lea.hbm %s665_s0, 64 }
   0x5   :  { %p495_p0 = scmp.ne.s32.totalorder %s665_s0, %s494_s18  ;;  %p498_p1 = scmp.lt.u32.totalorder %s494_s18, %s665_s0 }
   0x7   :  { %p500_p2 = pnand %p498_p1, %p495_p0 }
   0x9   :  { %503 = shalt.err (!%p500_p2)
}
   0xa   :  { %s504_s23 = scalar_lea.vmem %s18_s13, 64  ;;  %p509_p4 = scmp.lt.s32.totalorder %s18_s13, %s18_s13 }
   0xb   :  { %p505_p3 = scmp.ne.s32.totalorder %s18_s13, %s504_s23  ;;  %p510_p5 = scmp.lt.s32.totalorder %s504_s23, %s504_s23 }
   0xd   :  { %p511_p6 = por %p510_p5, %p509_p4 }
   0xf   :  { %p512_p7 = pnand %p511_p6, %p505_p3 }
  0x11   :  { %515 = shalt.err (!%p512_p7)
}
  0x12   :  { %20 = dma.hbm_to_vmem [thread:$0]  %s665_s0, 64, %s18_s13, [#allocation3]  }
  0x13   :  { %s516_s28 = scalar_lea.hbm %s666_s1, 4224 }
  0x14   :  { %p517_p8 = scmp.ne.s32.totalorder %s666_s1, %s516_s28  ;;  %p520_p9 = scmp.lt.u32.totalorder %s516_s28, %s666_s1 }
  0x16   :  { %p522_p10 = pnand %p520_p9, %p517_p8 }
  0x18   :  { %525 = shalt.err (!%p522_p10)
}
  0x19   :  { %s526_s6 = scalar_lea.vmem %s594_s15, 4224  ;;  %p531_p12 = scmp.lt.s32.totalorder %s594_s15, %s594_s15 }
  0x1a   :  { %p527_p11 = scmp.ne.s32.totalorder %s594_s15, %s526_s6  ;;  %p532_p13 = scmp.lt.s32.totalorder %s526_s6, %s526_s6 }
  0x1c   :  { %p533_p0 = por %p532_p13, %p531_p12 }
  0x1e   :  { %p534_p1 = pnand %p533_p0, %p527_p11 }
  0x20   :  { %537 = shalt.err (!%p534_p1)
}
  0x21   :  { %s568_s0 = smov 128   ;;  %s569_s7 = smov 8  }
  0x22   :  { %32 = dma.hbm_to_vmem [thread:$0]  %s666_s1, 4224, %s594_s15, [#allocation6], %s568_s0, %s568_s0, %s569_s7  }
  0x23   :  { %560 = dma.done.wait [#allocation3], 64  }
  0x24   :  { %561 = vsyncadd [#allocation3], 4294967232 }
  0x25   :  { %562 = dma.done.wait [#allocation6], 4224  }
  0x26   :  { %563 = vsyncadd [#allocation6], 4294963072  ;;  %v570_v0 = vmov 0.0   ;;  %vm571_vm0 = vmmov 0   ;;  %v572_v1 = vmov 0.0|0.0   ;;  %vm48_vm1 = vcmask 64512  }
  0x27   :  { %363 = vmatprep.subr.mxu0 %v570_v0  ;;  %365 = vmatprep.mubr.msk.f32.mxu0 %vm571_vm0, %v570_v0  ;;  %v42_v2 = vld [vmem:[#allocation5] sm:$0xff]  ;;  %v41_v3 = vld [vmem:[#allocation2] sm:$0xf]  ;;  %v123_v4 = vld [vmem:[#allocation5 + $0x8] sm:$0xff]  ;;  %s573_s15 = smov [#allocation7]  }
  0x28   :  { %438 = vmatprep.subr.bf16.mxu1 %v572_v1  ;;  %400 = vmatprep.mubr.msk.f32.mxu1 %vm571_vm0, %v570_v0  ;;  %v124_v5 = vld [vmem:[#allocation5 + $0x10] sm:$0xff]  ;;  %v125_v6 = vld [vmem:[#allocation5 + $0x18] sm:$0xff]  ;;  %v126_v7 = vld [vmem:[#allocation5 + $0x20] sm:$0xff]  ;;  %s313_s16 = sshll.u32 %s573_s15, 4  ;;  %s314_s16 = int_to_ptr.vmem [resolvable:$true] %s313_s16 }
  0x29   :  { %364 = vmatpush3.msra.mxu0 %v42_v2  ;;  %v439_v8 = vpack.c.bf16 %v124_v5, %v123_v4  ;;  %v442_v9 = vpack.c.bf16 %v126_v7, %v125_v6  ;;  %v127_v10 = vld [vmem:[#allocation5 + $0x28] sm:$0xff]  ;;  %v128_v11 = vld [vmem:[#allocation5 + $0x30] sm:$0xff]  ;;  %v129_v13 = vld [vmem:[#allocation5 + $0x38] sm:$0xff]  ;;  %s538_s17 = scalar_lea.vmem %s314_s16, 64  ;;  %p543_p3 = scmp.lt.s32.totalorder %s314_s16, %s314_s16 }
  0x2a   :  { %366 = vmatmul.mubr.msk.f32.vlgmr.msra.gmra.mrb[0].mxu0 %vm48_vm1, %v41_v3  ;;  %462 = vmatprep.subr.bf16.mxu0 %v572_v1  ;;  %v445_v12 = vpack.c.bf16 %v128_v11, %v127_v10  ;;  %v130_v14 = vld [vmem:[#allocation5 + $0x40] sm:$0xff]  ;;  %v131_v16 = vld [vmem:[#allocation5 + $0x48] sm:$0xff]  ;;  %v132_v17 = vld [vmem:[#allocation5 + $0x50] sm:$0xff]  ;;  %p539_p2 = scmp.ne.s32.totalorder %s314_s16, %s538_s17  ;;  %p544_p4 = scmp.lt.s32.totalorder %s538_s17, %s538_s17 }
  0x2b   :  { %435 = vmatprep.mubr.msk.f32.mxu0 %vm571_vm0, %v570_v0  ;;  %440 = vmatpush3.bf16.msra.mxu1 %v439_v8  ;;  %v448_v15 = vpack.c.bf16 %v130_v14, %v129_v13  ;;  %v451_v18 = vpack.c.bf16 %v132_v17, %v131_v16  ;;  %v133_v19 = vld [vmem:[#allocation5 + $0x58] sm:$0xff]  ;;  %v134_v20 = vld [vmem:[#allocation5 + $0x60] sm:$0xff]  ;;  %v135_v22 = vld [vmem:[#allocation5 + $0x68] sm:$0xff] }
  0x2c   :  { %441 = vmatprep.subr.bf16.mxu1 %v572_v1  ;;  %v454_v21 = vpack.c.bf16 %v134_v20, %v133_v19  ;;  %v136_v23 = vld [vmem:[#allocation5 + $0x70] sm:$0xff]  ;;  %v137_v25 = vld [vmem:[#allocation5 + $0x78] sm:$0xff]  ;;  %v138_v26 = vld [vmem:[#allocation5 + $0x80] sm:$0xff]  ;;  %p545_p5 = por %p544_p4, %p543_p3 }
  0x2d   :  { %v457_v24 = vpack.c.bf16 %v136_v23, %v135_v22  ;;  %v460_v27 = vpack.c.bf16 %v138_v26, %v137_v25  ;;  %v215_v28 = vld [vmem:[#allocation5 + $0x88] sm:$0xff]  ;;  %v216_v29 = vld [vmem:[#allocation5 + $0x90] sm:$0xff]  ;;  %v217_v30 = vld [vmem:[#allocation5 + $0x98] sm:$0xff] }
  0x2e   :  { %v463_v31 = vpack.c.bf16 %v216_v29, %v215_v28  ;;  %v218_v32 = vld [vmem:[#allocation5 + $0xa0] sm:$0xff]  ;;  %v219_v34 = vld [vmem:[#allocation5 + $0xa8] sm:$0xff]  ;;  %v220_v35 = vld [vmem:[#allocation5 + $0xb0] sm:$0xff]  ;;  %p546_p6 = pnand %p545_p5, %p539_p2 }
  0x2f   :  { %443 = vmatpush3.bf16.msra.mxu1 %v442_v9  ;;  %v466_v33 = vpack.c.bf16 %v218_v32, %v217_v30  ;;  %v469_v36 = vpack.c.bf16 %v220_v35, %v219_v34  ;;  %v221_v37 = vld [vmem:[#allocation5 + $0xb8] sm:$0xff]  ;;  %v222_v38 = vld [vmem:[#allocation5 + $0xc0] sm:$0xff]  ;;  %v223_v40 = vld [vmem:[#allocation5 + $0xc8] sm:$0xff] }
  0x30   :  { %444 = vmatprep.subr.bf16.mxu1 %v572_v1  ;;  %464 = vmatpush3.bf16.msra.mxu0 %v463_v31  ;;  %v472_v39 = vpack.c.bf16 %v222_v38, %v221_v37  ;;  %v224_v41 = vld [vmem:[#allocation5 + $0xd0] sm:$0xff]  ;;  %v225_v43 = vld [vmem:[#allocation5 + $0xd8] sm:$0xff]  ;;  %v226_v44 = vld [vmem:[#allocation5 + $0xe0] sm:$0xff] }
  0x31   :  { %465 = vmatprep.subr.bf16.mxu0 %v572_v1  ;;  %v475_v42 = vpack.c.bf16 %v224_v41, %v223_v40  ;;  %v478_v45 = vpack.c.bf16 %v226_v44, %v225_v43  ;;  %v227_v46 = vld [vmem:[#allocation5 + $0xe8] sm:$0xff]  ;;  %v228_v47 = vld [vmem:[#allocation5 + $0xf0] sm:$0xff]  ;;  %v323_v49 = vld [vmem:[%s667_s2] ss:$0 sm:$0xff] }
  0x32   :  { %v481_v48 = vpack.c.bf16 %v228_v47, %v227_v46  ;;  %v229_v54 = vld [vmem:[#allocation5 + $0xf8] sm:$0xff]  ;;  %v230_v55 = vld [vmem:[#allocation5 + $0x100] sm:$0xff] }
  0x33   :  { %446 = vmatpush3.bf16.msra.mxu1 %v445_v12  ;;  %v484_v56 = vpack.c.bf16 %v230_v55, %v229_v54  ;;  %v325_v57 = vld [vmem:[%s667_s2 + $0x1] ss:$0 sm:$0xff]  ;;  %v326_v62 = vld [vmem:[%s667_s2 + $0x2] ss:$0 sm:$0xff] }
  0x34   :  { %447 = vmatprep.subr.bf16.mxu1 %v572_v1  ;;  %467 = vmatpush3.bf16.msra.mxu0 %v466_v33 }
  0x35   :  { %468 = vmatprep.subr.bf16.mxu0 %v572_v1 }
  0x37   :  { %449 = vmatpush3.bf16.msra.mxu1 %v448_v15 }
  0x38   :  { %450 = vmatprep.subr.bf16.mxu1 %v572_v1  ;;  %470 = vmatpush3.bf16.msra.mxu0 %v469_v36 }
  0x39   :  { %471 = vmatprep.subr.bf16.mxu0 %v572_v1 }
  0x3b   :  { %452 = vmatpush3.bf16.msra.mxu1 %v451_v18 }
  0x3c   :  { %453 = vmatprep.subr.bf16.mxu1 %v572_v1  ;;  %473 = vmatpush3.bf16.msra.mxu0 %v472_v39 }
  0x3d   :  { %474 = vmatprep.subr.bf16.mxu0 %v572_v1 }
  0x3f   :  { %455 = vmatpush3.bf16.msra.mxu1 %v454_v21 }
  0x40   :  { %456 = vmatprep.subr.bf16.mxu1 %v572_v1  ;;  %476 = vmatpush3.bf16.msra.mxu0 %v475_v42 }
  0x41   :  { %477 = vmatprep.subr.bf16.mxu0 %v572_v1 }
  0x43   :  { %458 = vmatpush3.bf16.msra.mxu1 %v457_v24 }
  0x44   :  { %459 = vmatprep.subr.bf16.mxu1 %v572_v1  ;;  %479 = vmatpush3.bf16.msra.mxu0 %v478_v45 }
  0x45   :  { %480 = vmatprep.subr.bf16.mxu0 %v572_v1 }
  0x47   :  { %461 = vmatpush3.bf16.msra.mxu1 %v460_v27 }
  0x48   :  { %482 = vmatpush3.bf16.msra.mxu0 %v481_v48 }
  0x49   :  { %483 = vmatprep.subr.bf16.mxu0 %v572_v1 }
  0x4c   :  { %485 = vmatpush3.bf16.msra.mxu0 %v484_v56 }
  0xfd   :  { %v118_v50 = vpop.f32.mrb[0].mxu0 }
  0xfe   :  { %v119_v51 = vadd.f32 %v323_v49, %v118_v50  ;;  %v367_v52 = vpop.f32.mrb[1].mxu0 }
 0x100   :  { %v122_v53 = vmax.f32 %v119_v51, 0.0 }
 0x102   :  { %401 = vmatmul.mubr.f32.vlgmr.msra.gmra.mrb[0].mxu1 %v122_v53 }
 0x1d5   :  { %v210_v58 = vpop.f32.mrb[0].mxu1 }
 0x1d6   :  { %v211_v59 = vadd.f32 %v325_v57, %v210_v58  ;;  %v402_v60 = vpop.f32.mrb[1].mxu1 }
 0x1d8   :  { %v214_v61 = vmax.f32 %v211_v59, 0.0 }
 0x1da   :  { %436 = vmatmul.mubr.f32.vlgmr.msra.gmra.mrb[2].mxu0 %v214_v61 }
 0x2ad   :  { %v302_v63 = vpop.f32.mrb[2].mxu0 }
 0x2ae   :  { %v303_v0 = vadd.f32 %v326_v62, %v302_v63  ;;  %v437_v1 = vpop.f32.mrb[3].mxu0 }
 0x2b0   :  { %306 = vst [vmem:[#allocation7] sm:$0xf] %v303_v0 }
 0x2b1   :  { %549 = shalt.err (!%p546_p6)
}
 0x2b2   :  { %s550_s20 = scalar_lea.hbm %s668_s3, 64 }
 0x2b3   :  { %p551_p7 = scmp.ne.s32.totalorder %s668_s3, %s550_s20  ;;  %p554_p8 = scmp.lt.u32.totalorder %s550_s20, %s668_s3 }
 0x2b5   :  { %p556_p9 = pnand %p554_p8, %p551_p7 }
 0x2b7   :  { %559 = shalt.err (!%p556_p9)
}
 0x2b8   :  { %316 = dma.vmem_to_hbm [thread:$0]  %s314_s16, 64, %s668_s3, [#allocation4]  }
 0x2b9   :  { %564 = dma.done.wait [#allocation4], 64  }
 0x2ba   :  { %565 = vsyncadd [#allocation4], 4294967232 }
 0x2bb   :  { %320 = vsyncpa [#allocation3], 1 }
 0x2bc   :  { %321 = vsyncpa [#allocation6], 1 }
 0x2bd   :  { %322 = vsyncpa [#allocation4], 1 }

</bundles_post_ra>
